<compile_context>
chip_gen: v7x
topology: tpu7x:2x2x1
jax: 0.10.0
libtpu: 0.0.40
codegen_flags: <defaults>
</compile_context>

<pallas_src>
import math

import jax
import jax.numpy as jnp
from jax.experimental import pallas as pl
from jax.experimental.pallas import tpu as pltpu

PERIOD = 2              # static construction-time constant of Periodically
TAU = 0.05              # body(): soft target update coefficient
COLS = 512              # lane-dense slab width (multiple of 128)
MAX_BLOCK_ROWS = 1024   # 1024*512*4B = 2 MiB/block; 3 arrays x 2 bufs = 12 MiB
VMEM_LIMIT_BYTES = 32 * 1024 * 1024

# TODO(synk): the original module also special-cases `period is None`
# (early return); `period` here is a static positive int, so that branch is
# not representable / not needed.


# --------------------------------------------------------------------------
# Pallas kernel: fused soft update over one lane-dense block of the slab.
# --------------------------------------------------------------------------
def _soft_update_kernel(src_ref, tgt_ref, out_ref):
    t = tgt_ref[...]
    out_ref[...] = t + TAU * (src_ref[...] - t)


def _block_rows(rows):
    """Largest (8,*)-aligned row tile <= MAX_BLOCK_ROWS that divides `rows`."""
    if rows <= MAX_BLOCK_ROWS:
        return rows
    br = MAX_BLOCK_ROWS
    while rows % br:
        br -= 8
    return br


def _fused_soft_update(source, target):
    """body(): target <- target + tau*(source - target), one pallas_call."""
    rows, cols = target.shape
    assert rows % 8 == 0 and cols % 128 == 0, "slab must be (8,128)-aligned"
    br = _block_rows(rows)
    grid = (rows // br,)
    return pl.pallas_call(
        _soft_update_kernel,
        out_shape=jax.ShapeDtypeStruct(target.shape, target.dtype),
        grid=grid,
        in_specs=[
            pl.BlockSpec((br, cols), lambda i: (i, 0)),   # source
            pl.BlockSpec((br, cols), lambda i: (i, 0)),   # target
        ],
        out_specs=pl.BlockSpec((br, cols), lambda i: (i, 0)),
        # target slab updated in place (new_target aliases target).
        input_output_aliases={1: 0},
        compiler_params=pltpu.CompilerParams(
            dimension_semantics=("parallel",),
            vmem_limit_bytes=VMEM_LIMIT_BYTES),
    )(source, target)


# --------------------------------------------------------------------------
# Periodically.forward()
# --------------------------------------------------------------------------
def _is_hit(counter):
    if PERIOD & (PERIOD - 1) == 0:            # power of two -> bitmask
        return (counter & (PERIOD - 1)) == 0
    return (counter % PERIOD) == 0


def periodically_step(counter, source, target):
    """One Periodically.forward() step.

    Args:
      counter: int32[]        internal step counter (explicit state).
      source:  f32[R, COLS]   packed "source" param slab read by body().
      target:  f32[R, COLS]   packed "target" param slab mutated by body().
    Returns:
      (new_counter int32[], new_target f32[R, COLS])

    Miss steps (counter % period != 0) skip the Pallas call entirely: no
    HBM<->VMEM traffic, just a scalar increment. Callers that want the true
    in-place update should donate `target` (and `counter`) at the jit level.
    """
    new_counter = counter + 1
    hit = _is_hit(new_counter)
    new_target = jax.lax.cond(
        hit,
        _fused_soft_update,       # body(): fused Pallas soft update
        lambda s, t: t,           # miss: target untouched, zero DMA
        source, target)
    return new_counter, new_target


# --------------------------------------------------------------------------
# One-time packing of a parameter tree into a lane-dense slab (construction-
# time layout plumbing, NOT per-step work).
# --------------------------------------------------------------------------
def pack_tree(tree, cols=COLS):
    leaves = jax.tree_util.tree_leaves(tree)
    flat = jnp.concatenate([jnp.ravel(x).astype(jnp.float32) for x in leaves])
    n = int(flat.size)
    rows = pl.cdiv(n, cols)
    rows = pl.cdiv(rows, 8) * 8                       # (8,128)-align the slab
    slab = jnp.pad(flat, (0, rows * cols - n)).reshape(rows, cols)
    return slab, n


def unpack_tree(slab, tree_example, n):
    flat = slab.reshape(-1)[:n]
    leaves = jax.tree_util.tree_leaves(tree_example)
    out, off = [], 0
    for x in leaves:
        sz = math.prod(x.shape)
        out.append(flat[off:off + sz].reshape(x.shape))
        off += sz
    return jax.tree_util.tree_unflatten(
        jax.tree_util.tree_structure(tree_example), out)


# --------------------------------------------------------------------------
if __name__ == "__main__":
    key = jax.random.PRNGKey(0)
    ks = jax.random.split(key, 8)

    # Small synthetic "target network" parameter tree (fused into one slab).
    shapes = [(64, 128), (128, 64), (4, 16, 32)]
    source_tree = [jax.random.normal(ks[i], s, jnp.float32)
                   for i, s in enumerate(shapes)]
    target_tree = [jax.random.normal(ks[3 + i], s, jnp.float32)
                   for i, s in enumerate(shapes)]

    src_slab, n_params = pack_tree(source_tree)
    tgt_slab, _ = pack_tree(target_tree)
    counter = jnp.int32(0)

    step = jax.jit(periodically_step)

    # step 1: counter -> 1, 1 % 2 != 0  => body NOT called (target unchanged,
    # no kernel launch / no DMA on the miss path).
    c1, t1 = step(counter, src_slab, tgt_slab)
    jax.block_until_ready((c1, t1))
    assert int(c1) == 1
    assert bool(jnp.array_equal(t1, tgt_slab)), "step 1 must not touch target"

    # step 2: counter -> 2, 2 % 2 == 0  => body called (fused soft update).
    c2, t2 = step(c1, src_slab, t1)
    jax.block_until_ready((c2, t2))
    assert int(c2) == 2
    new_tree = unpack_tree(t2, target_tree, n_params)
    for s_ref, t_ref, t_new in zip(source_tree, target_tree, new_tree):
        expected = TAU * s_ref + (1.0 - TAU) * t_ref
        assert bool(jnp.allclose(t_new, expected, rtol=1e-6, atol=1e-6)), \
            "step 2 must apply the periodic soft update"

    # step 3: counter -> 3, miss again => target passes through untouched.
    c3, t3 = step(c2, src_slab, t2)
    jax.block_until_ready((c3, t3))
    assert int(c3) == 3
    assert bool(jnp.array_equal(t3, t2)), "step 3 must not touch target"

    # Larger slab: exercises the multi-block grid path (grid > 1, big tiles).
    big_src = jax.random.normal(ks[6], (2048, COLS), jnp.float32)
    big_tgt = jax.random.normal(ks[7], (2048, COLS), jnp.float32)
    cb1, tb1 = step(jnp.int32(0), big_src, big_tgt)          # miss
    cb2, tb2 = step(cb1, big_src, tb1)                       # hit
    jax.block_until_ready((cb2, tb2))
    assert bool(jnp.array_equal(tb1, big_tgt))
    big_expected = big_tgt + TAU * (big_src - big_tgt)
    assert bool(jnp.allclose(tb2, big_expected, rtol=1e-6, atol=1e-6)), \
        "multi-block soft update mismatch"

    print("KERNEL_OK")
</pallas_src>

<mosaic_0001>
module attributes {stable_mosaic.version = 11 : i64} {
  func.func @_soft_update_kernel(%arg0: i32, %arg1: memref<40x512xf32, #tpu.memory_space<vmem>>, %arg2: memref<40x512xf32, #tpu.memory_space<vmem>>, %arg3: memref<40x512xf32, #tpu.memory_space<vmem>>) attributes {dimension_semantics = [#tpu.dimension_semantics<parallel>], iteration_bounds = array<i64: 1>, scalar_prefetch = 0 : i64, scratch_operands = 0 : i64, tpu.core_type = #tpu.core_type<tc>, window_params = [{transform_indices = @transform_0, window_bounds = array<i64: 40, 512>}, {transform_indices = @transform_1, window_bounds = array<i64: 40, 512>}, {transform_indices = @transform_2, window_bounds = array<i64: 40, 512>}]} {
    %c0 = arith.constant 0 : index
    %c0_0 = arith.constant 0 : index
    %0 = vector.load %arg2[%c0, %c0_0] : memref<40x512xf32, #tpu.memory_space<vmem>>, vector<40x512xf32>
    %c0_1 = arith.constant 0 : index
    %c0_2 = arith.constant 0 : index
    %1 = vector.load %arg1[%c0_1, %c0_2] : memref<40x512xf32, #tpu.memory_space<vmem>>, vector<40x512xf32>
    %2 = arith.subf %1, %0 : vector<40x512xf32>
    %cst = arith.constant 5.000000e-02 : f32
    %3 = vector.broadcast %cst : f32 to vector<40x512xf32>
    %4 = arith.mulf %3, %2 : vector<40x512xf32>
    %5 = arith.addf %0, %4 : vector<40x512xf32>
    %c0_3 = arith.constant 0 : index
    %c0_4 = arith.constant 0 : index
    %6 = vector.load %arg3[%c0_3, %c0_4] : memref<40x512xf32, #tpu.memory_space<vmem>>, vector<40x512xf32>
    tpu.vector_store %arg3[%c0_3, %c0_4], %5 {strides = array<i32>} : memref<40x512xf32, #tpu.memory_space<vmem>>, vector<40x512xf32>,
    return
  }
  func.func @transform_0(%arg0: i32) -> (i32, i32) {
    %c0_i32 = arith.constant 0 : i32
    %c0_i32_0 = arith.constant 0 : i32
    return %arg0, %c0_i32 : i32, i32
  }
  func.func @transform_1(%arg0: i32) -> (i32, i32) {
    %c0_i32 = arith.constant 0 : i32
    %c0_i32_0 = arith.constant 0 : i32
    return %arg0, %c0_i32 : i32, i32
  }
  func.func @transform_2(%arg0: i32) -> (i32, i32) {
    %c0_i32 = arith.constant 0 : i32
    %c0_i32_0 = arith.constant 0 : i32
    return %arg0, %c0_i32 : i32, i32
  }
}

</mosaic_0001>

<bundles_post_ra>
// kernel: branch_1_fun.1
= control target key start
LH: loop header
LB: loop body
LE: loop exit
PB: predicated region body
PF: predicated region fallthrough
CT: control target
= control target key end

     0   :  { %7 = vsyncpa [#allocation3], 0  ;;  %s324_s0 = inlined_call_operand.vmem [shape: f32[40,512], index: 0, kind: input, shape index: {}]   ;;  %s325_s1 = inlined_call_operand.hbm [shape: f32[40,512], index: 1, kind: input, shape index: {}, may-alias: {1,2}]   ;;  %s326_s2 = inlined_call_operand.hbm [shape: f32[40,512], index: 2, kind: output, shape index: {}, may-alias: {1,2}]  }
   0x1   :  { %8 = vsyncpa [#allocation4], 0  ;;  %s215_s9 = smov [#allocation2]   ;;  %s167_s13 = scalar_lea.hbm %s325_s1, 2560 }
   0x2   :  { %s16_s10 = sshll.u32 %s215_s9, 4  ;;  %p168_p0 = scmp.ne.s32.totalorder %s325_s1, %s167_s13  ;;  %s17_s10 = int_to_ptr.vmem [resolvable:$true] %s16_s10 }
   0x3   :  { %p171_p1 = scmp.lt.u32.totalorder %s167_s13, %s325_s1 }
   0x5   :  { %p173_p2 = pnand %p171_p1, %p168_p0 }
   0x7   :  { %176 = shalt.err (!%p173_p2)
}
   0x8   :  { %s177_s18 = scalar_lea.vmem %s17_s10, 2560  ;;  %p182_p4 = scmp.lt.s32.totalorder %s17_s10, %s17_s10 }
   0x9   :  { %p178_p3 = scmp.ne.s32.totalorder %s17_s10, %s177_s18  ;;  %p183_p5 = scmp.lt.s32.totalorder %s177_s18, %s177_s18 }
   0xb   :  { %p184_p6 = por %p183_p5, %p182_p4 }
   0xd   :  { %p185_p7 = pnand %p184_p6, %p178_p3 }
   0xf   :  { %188 = shalt.err (!%p185_p7)
}
  0x10   :  { %s216_s19 = smov 512   ;;  %s217_s20 = smov 32  }
  0x11   :  { %22 = dma.hbm_to_vmem [thread:$0]  %s325_s1, 2560, %s17_s10, [#allocation3], %s216_s19, %s216_s19, %s217_s20  }
  0x12   :  { %211 = dma.done.wait [#allocation3], 2560  }
  0x13   :  { %212 = vsyncadd [#allocation3], 4294964736  ;;  %v26_v0 = vld [vmem:[#allocation2] sm:$0xff]  ;;  %v27_v2 = vld [vmem:[#allocation2 + $0x8] sm:$0xff]  ;;  %s218_s7 = smov [#allocation5]  }
  0x14   :  { %v46_v1 = vld [vmem:[%s324_s0] sm:$0xff]  ;;  %v47_v4 = vld [vmem:[%s324_s0 + $0x8] sm:$0xff]  ;;  %v28_v5 = vld [vmem:[#allocation2 + $0x10] sm:$0xff]  ;;  %s151_s8 = sshll.u32 %s218_s7, 4  ;;  %s152_s8 = int_to_ptr.vmem [resolvable:$true] %s151_s8 }
  0x15   :  { %v66_v3 = vsub.f32 %v46_v1, %v26_v0  ;;  %v48_v6 = vld [vmem:[%s324_s0 + $0x10] sm:$0xff]  ;;  %v67_v7 = vsub.f32 %v47_v4, %v27_v2  ;;  %v29_v9 = vld [vmem:[#allocation2 + $0x18] sm:$0xff]  ;;  %v30_v11 = vld [vmem:[#allocation2 + $0x20] sm:$0xff]  ;;  %p194_p9 = scmp.lt.s32.totalorder %s152_s8, %s152_s8 }
  0x16   :  { %v68_v8 = vsub.f32 %v48_v6, %v28_v5  ;;  %v49_v10 = vld [vmem:[%s324_s0 + $0x18] sm:$0xff]  ;;  %v50_v14 = vld [vmem:[%s324_s0 + $0x20] sm:$0xff]  ;;  %v31_v15 = vld [vmem:[#allocation2 + $0x28] sm:$0xff] }
  0x17   :  { %v86_v12 = vmul.f32 0.05, %v66_v3  ;;  %v69_v13 = vsub.f32 %v49_v10, %v29_v9  ;;  %v51_v16 = vld [vmem:[%s324_s0 + $0x28] sm:$0xff]  ;;  %v87_v17 = vmul.f32 0.05, %v67_v7  ;;  %v70_v19 = vsub.f32 %v50_v14, %v30_v11  ;;  %v32_v21 = vld [vmem:[#allocation2 + $0x30] sm:$0xff] }
  0x18   :  { %v88_v18 = vmul.f32 0.05, %v68_v8  ;;  %v71_v20 = vsub.f32 %v51_v16, %v31_v15  ;;  %v52_v22 = vld [vmem:[%s324_s0 + $0x30] sm:$0xff]  ;;  %v33_v26 = vld [vmem:[#allocation2 + $0x38] sm:$0xff]  ;;  %v34_v28 = vld [vmem:[#allocation2 + $0x40] sm:$0xff] }
  0x19   :  { %v106_v23 = vadd.f32 %v86_v12, %v26_v0  ;;  %v89_v24 = vmul.f32 0.05, %v69_v13  ;;  %v72_v25 = vsub.f32 %v52_v22, %v32_v21  ;;  %v53_v27 = vld [vmem:[%s324_s0 + $0x38] sm:$0xff]  ;;  %v107_v29 = vadd.f32 %v87_v17, %v27_v2  ;;  %v54_v33 = vld [vmem:[%s324_s0 + $0x40] sm:$0xff]  ;;  %v35_v34 = vld [vmem:[#allocation2 + $0x48] sm:$0xff] }
  0x1a   :  { %v108_v30 = vadd.f32 %v88_v18, %v28_v5  ;;  %v90_v31 = vmul.f32 0.05, %v70_v19  ;;  %v91_v32 = vmul.f32 0.05, %v71_v20  ;;  %v73_v37 = vsub.f32 %v53_v27, %v33_v26  ;;  %v55_v39 = vld [vmem:[%s324_s0 + $0x48] sm:$0xff]  ;;  %v36_v40 = vld [vmem:[#allocation2 + $0x50] sm:$0xff] }
  0x1b   :  { %126 = vst [vmem:[#allocation5] sm:$0xff] %v106_v23  ;;  %v109_v35 = vadd.f32 %v89_v24, %v29_v9  ;;  %v92_v36 = vmul.f32 0.05, %v72_v25  ;;  %v74_v38 = vsub.f32 %v54_v33, %v34_v28  ;;  %v56_v41 = vld [vmem:[%s324_s0 + $0x50] sm:$0xff]  ;;  %127 = vst [vmem:[#allocation5 + $0x8] sm:$0xff] %v107_v29  ;;  %v75_v44 = vsub.f32 %v55_v39, %v35_v34  ;;  %v37_v46 = vld [vmem:[#allocation2 + $0x58] sm:$0xff] }
  0x1c   :  { %128 = vst [vmem:[#allocation5 + $0x10] sm:$0xff] %v108_v30  ;;  %v110_v42 = vadd.f32 %v90_v31, %v30_v11  ;;  %v111_v43 = vadd.f32 %v91_v32, %v31_v15  ;;  %v76_v45 = vsub.f32 %v56_v41, %v36_v40  ;;  %v57_v47 = vld [vmem:[%s324_s0 + $0x58] sm:$0xff]  ;;  %v38_v48 = vld [vmem:[#allocation2 + $0x60] sm:$0xff]  ;;  %v93_v50 = vmul.f32 0.05, %v73_v37  ;;  %v39_v54 = vld [vmem:[#allocation2 + $0x68] sm:$0xff] }
  0x1d   :  { %129 = vst [vmem:[#allocation5 + $0x18] sm:$0xff] %v109_v35  ;;  %v112_v49 = vadd.f32 %v92_v36, %v32_v21  ;;  %v94_v51 = vmul.f32 0.05, %v74_v38  ;;  %v77_v52 = vsub.f32 %v57_v47, %v37_v46  ;;  %v58_v53 = vld [vmem:[%s324_s0 + $0x60] sm:$0xff]  ;;  %v95_v55 = vmul.f32 0.05, %v75_v44 }
  0x1e   :  { %130 = vst [vmem:[#allocation5 + $0x20] sm:$0xff] %v110_v42  ;;  %131 = vst [vmem:[#allocation5 + $0x28] sm:$0xff] %v111_v43  ;;  %v96_v56 = vmul.f32 0.05, %v76_v45  ;;  %v78_v57 = vsub.f32 %v58_v53, %v38_v48  ;;  %v59_v58 = vld [vmem:[%s324_s0 + $0x68] sm:$0xff]  ;;  %v40_v59 = vld [vmem:[#allocation2 + $0x70] sm:$0xff]  ;;  %v113_v60 = vadd.f32 %v93_v50, %v33_v26 }
  0x1f   :  { %132 = vst [vmem:[#allocation5 + $0x30] sm:$0xff] %v112_v49  ;;  %v114_v61 = vadd.f32 %v94_v51, %v34_v28  ;;  %v97_v62 = vmul.f32 0.05, %v77_v52  ;;  %v79_v63 = vsub.f32 %v59_v58, %v39_v54  ;;  %v60_v0 = vld [vmem:[%s324_s0 + $0x70] sm:$0xff]  ;;  %v41_v1 = vld [vmem:[#allocation2 + $0x78] sm:$0xff]  ;;  %v115_v3 = vadd.f32 %v95_v55, %v35_v34  ;;  %v42_v7 = vld [vmem:[#allocation2 + $0x80] sm:$0xff] }
  0x20   :  { %v61_v2 = vld [vmem:[%s324_s0 + $0x78] sm:$0xff]  ;;  %v116_v4 = vadd.f32 %v96_v56, %v36_v40  ;;  %v98_v5 = vmul.f32 0.05, %v78_v57  ;;  %v80_v6 = vsub.f32 %v60_v0, %v40_v59  ;;  %v62_v8 = vld [vmem:[%s324_s0 + $0x80] sm:$0xff]  ;;  %v43_v9 = vld [vmem:[#allocation2 + $0x88] sm:$0xff]  ;;  %133 = vst [vmem:[#allocation5 + $0x38] sm:$0xff] %v113_v60 }
  0x21   :  { %134 = vst [vmem:[#allocation5 + $0x40] sm:$0xff] %v114_v61  ;;  %v117_v10 = vadd.f32 %v97_v62, %v37_v46  ;;  %v99_v11 = vmul.f32 0.05, %v79_v63  ;;  %v81_v12 = vsub.f32 %v61_v2, %v41_v1  ;;  %v82_v13 = vsub.f32 %v62_v8, %v42_v7  ;;  %v63_v14 = vld [vmem:[%s324_s0 + $0x88] sm:$0xff]  ;;  %v44_v15 = vld [vmem:[#allocation2 + $0x90] sm:$0xff]  ;;  %135 = vst [vmem:[#allocation5 + $0x48] sm:$0xff] %v115_v3 }
  0x22   :  { %v64_v16 = vld [vmem:[%s324_s0 + $0x90] sm:$0xff]  ;;  %136 = vst [vmem:[#allocation5 + $0x50] sm:$0xff] %v116_v4  ;;  %v118_v17 = vadd.f32 %v98_v5, %v38_v48  ;;  %v100_v18 = vmul.f32 0.05, %v80_v6  ;;  %v83_v19 = vsub.f32 %v63_v14, %v43_v9  ;;  %v45_v21 = vld [vmem:[#allocation2 + $0x98] sm:$0xff] }
  0x23   :  { %v84_v20 = vsub.f32 %v64_v16, %v44_v15  ;;  %v65_v22 = vld [vmem:[%s324_s0 + $0x98] sm:$0xff]  ;;  %137 = vst [vmem:[#allocation5 + $0x58] sm:$0xff] %v117_v10  ;;  %v119_v23 = vadd.f32 %v99_v11, %v39_v54  ;;  %v101_v24 = vmul.f32 0.05, %v81_v12  ;;  %v102_v25 = vmul.f32 0.05, %v82_v13 }
  0x24   :  { %v85_v26 = vsub.f32 %v65_v22, %v45_v21  ;;  %138 = vst [vmem:[#allocation5 + $0x60] sm:$0xff] %v118_v17  ;;  %v120_v27 = vadd.f32 %v100_v18, %v40_v59  ;;  %v103_v28 = vmul.f32 0.05, %v83_v19  ;;  %s189_s0 = scalar_lea.vmem %s152_s8, 2560 }
  0x25   :  { %v104_v29 = vmul.f32 0.05, %v84_v20  ;;  %139 = vst [vmem:[#allocation5 + $0x68] sm:$0xff] %v119_v23  ;;  %v121_v30 = vadd.f32 %v101_v24, %v41_v1  ;;  %v122_v31 = vadd.f32 %v102_v25, %v42_v7  ;;  %p190_p8 = scmp.ne.s32.totalorder %s152_s8, %s189_s0  ;;  %p195_p10 = scmp.lt.s32.totalorder %s189_s0, %s189_s0 }
  0x26   :  { %v105_v32 = vmul.f32 0.05, %v85_v26  ;;  %140 = vst [vmem:[#allocation5 + $0x70] sm:$0xff] %v120_v27  ;;  %v123_v33 = vadd.f32 %v103_v28, %v43_v9 }
  0x27   :  { %v124_v34 = vadd.f32 %v104_v29, %v44_v15  ;;  %141 = vst [vmem:[#allocation5 + $0x78] sm:$0xff] %v121_v30  ;;  %142 = vst [vmem:[#allocation5 + $0x80] sm:$0xff] %v122_v31  ;;  %p196_p11 = por %p195_p10, %p194_p9 }
  0x28   :  { %v125_v35 = vadd.f32 %v105_v32, %v45_v21  ;;  %143 = vst [vmem:[#allocation5 + $0x88] sm:$0xff] %v123_v33 }
  0x29   :  { %144 = vst [vmem:[#allocation5 + $0x90] sm:$0xff] %v124_v34  ;;  %p197_p12 = pnand %p196_p11, %p190_p8 }
  0x2a   :  { %145 = vst [vmem:[#allocation5 + $0x98] sm:$0xff] %v125_v35 }
  0x2b   :  { %200 = shalt.err (!%p197_p12)
}
  0x2c   :  { %s201_s11 = scalar_lea.hbm %s326_s2, 2560 }
  0x2d   :  { %p202_p13 = scmp.ne.s32.totalorder %s326_s2, %s201_s11  ;;  %p205_p0 = scmp.lt.u32.totalorder %s201_s11, %s326_s2 }
  0x2f   :  { %p207_p1 = pnand %p205_p0, %p202_p13 }
  0x31   :  { %210 = shalt.err (!%p207_p1)
}
  0x32   :  { %157 = dma.vmem_to_hbm [thread:$0]  %s152_s8, 2560, %s326_s2, [#allocation4], %s216_s19, %s216_s19, %s217_s20  }
  0x33   :  { %213 = dma.done.wait [#allocation4], 2560  }
  0x34   :  { %214 = vsyncadd [#allocation4], 4294964736 }
  0x35   :  { %161 = vsyncpa [#allocation3], 1 }
  0x36   :  { %162 = vsyncpa [#allocation4], 1 }

</bundles_post_ra>
